<compile_context>
chip_gen: v7x
topology: tpu7x:2x2x1
jax: 0.10.0
libtpu: 0.0.40
codegen_flags: <defaults>
</compile_context>

<pallas_src>
import math

import jax
import jax.numpy as jnp
import numpy as np
from jax.experimental import pallas as pl
from jax.experimental.pallas import tpu as pltpu

# ---------------- model dims (small, consistent with 'batch seq d_model') ----------------
B = 2            # batch
S = 8            # seq
D = 32           # d_model
NH = 4           # num heads
HD = D // NH     # head dim
H = 4 * D        # mlp hidden (=128)
BS = B * S       # folded row axis (=16)
DP = 128         # padded lane width (lane-dense layout), >= max(D, 3*D, H)
EPS = 1e-5

assert D <= DP and 3 * D <= DP and H <= DP

# ---- constant f32 block (mask + small params), all rows DP=128 lanes wide ----
MASK_OFF = 0                       # rows [0, 16): combined additive mask (lanes 0:BS)
LN1G_ROW = BS + 0
LN1B_ROW = BS + 1
LN2G_ROW = BS + 2
LN2B_ROW = BS + 3
BQKV_ROW = BS + 4
BO_ROW = BS + 5
B1_ROW = BS + 6
B2_ROW = BS + 7
CONST_ROWS = BS + 8                # 24

# ---- bf16 weight slab row offsets ----
WQKV_OFF = 0                       # rows [  0, 128): [wq|wk|wv], input rows padded to DP
WO_OFF = WQKV_OFF + DP             # rows [128, 160): wo (D rows, cols 0:D)
W1_OFF = WO_OFF + D                # rows [160, 288): w1, input rows padded to DP, cols 0:H
W2_OFF = W1_OFF + DP               # rows [288, 416): w2 (H rows, cols 0:D)
W_ROWS = W2_OFF + H                # 416


def _gelu(x):
    # tanh-approximate GELU (EUP-friendly on TPU)
    c = math.sqrt(2.0 / math.pi)
    return 0.5 * x * (1.0 + jnp.tanh(c * (x + 0.044715 * x * x * x)))


# ---------------------------------- fused kernel ----------------------------------
def block_kernel(x_ref, c_ref, w_ref, out_ref):
    x = x_ref[...]                                   # (BS, DP) f32; lanes [D, DP) are zero
    bigmask = c_ref[MASK_OFF:MASK_OFF + BS, 0:BS]    # (BS, BS) additive mask

    # Each (1, DP) parameter row is consumed exactly once below -> exactly one
    # broadcast_in_dim per parameter (no re-broadcast at every use).
    ln1g = c_ref[LN1G_ROW:LN1G_ROW + 1, :]
    ln1b = c_ref[LN1B_ROW:LN1B_ROW + 1, :]
    ln2g = c_ref[LN2G_ROW:LN2G_ROW + 1, :]
    ln2b = c_ref[LN2B_ROW:LN2B_ROW + 1, :]
    bqkv = c_ref[BQKV_ROW:BQKV_ROW + 1, :]
    bo = c_ref[BO_ROW:BO_ROW + 1, :]
    b1 = c_ref[B1_ROW:B1_ROW + 1, :]
    b2 = c_ref[B2_ROW:B2_ROW + 1, :]

    inv_d = jnp.float32(1.0 / D)

    def layernorm(v, g, b):
        # Pad lanes of v are zero, so full-lane sums give the true D-column moments;
        # var = E[x^2] - mu^2 removes the colmask / masked-diff pass.
        # Zero-padded g/b keep pad lanes at 0 on the way out.
        mu = jnp.sum(v, axis=-1, keepdims=True) * inv_d
        var = jnp.sum(v * v, axis=-1, keepdims=True) * inv_d - mu * mu
        return (v - mu) * jax.lax.rsqrt(var + EPS) * g + b

    # ---- norm1 + fused QKV projection (single bf16 MXU pass, 128-lane-dense output) ----
    h1 = layernorm(x, ln1g, ln1b)                                        # (BS, DP) f32
    qkv = jnp.dot(h1.astype(jnp.bfloat16), w_ref[WQKV_OFF:WQKV_OFF + DP, :],
                  preferred_element_type=jnp.float32) + bqkv             # (BS, DP): [q|k|v|0]

    # bf16 MXU operands; one whole-block K transpose instead of one per head
    q_bf = qkv[:, 0:D].astype(jnp.bfloat16)                              # (BS, D)
    kT_bf = qkv[:, D:2 * D].T.astype(jnp.bfloat16)                       # (D, BS)
    v_bf = qkv[:, 2 * D:3 * D].astype(jnp.bfloat16)                      # (BS, D)

    # ---- multi-head attention: batch separation folded into rows via bigmask ----
    scale = jnp.float32(1.0 / math.sqrt(HD))
    ah_list = []
    for h in range(NH):                                                  # NH=4, unrolled
        s = jnp.dot(q_bf[:, h * HD:(h + 1) * HD],
                    kT_bf[h * HD:(h + 1) * HD, :],
                    preferred_element_type=jnp.float32)                  # (BS, BS) = q @ k^T
        s = s * scale + bigmask
        m = jnp.max(s, axis=-1, keepdims=True)
        p = jnp.exp(s - m)
        p = p * pl.reciprocal(jnp.sum(p, axis=-1, keepdims=True), approx=True)
        ah_list.append(jnp.dot(p.astype(jnp.bfloat16),
                               v_bf[:, h * HD:(h + 1) * HD],
                               preferred_element_type=jnp.float32))      # (BS, HD) f32

    # single fused output projection over all heads (one MXU pass instead of 4 + 3 adds)
    attn = jnp.dot(jnp.concatenate(ah_list, axis=-1).astype(jnp.bfloat16),
                   w_ref[WO_OFF:WO_OFF + D, :],
                   preferred_element_type=jnp.float32)                   # (BS, DP)
    x1 = x + attn + bo                                                   # residual 1

    # ---- norm2 + GELU MLP (bf16 MXU operands, f32 VPU/EUP math) ----
    h2 = layernorm(x1, ln2g, ln2b)                                       # (BS, DP)
    z = _gelu(jnp.dot(h2.astype(jnp.bfloat16), w_ref[W1_OFF:W1_OFF + DP, :],
                      preferred_element_type=jnp.float32) + b1)          # (BS, DP=H)
    mlp = jnp.dot(z.astype(jnp.bfloat16), w_ref[W2_OFF:W2_OFF + DP, :],
                  preferred_element_type=jnp.float32) + b2               # (BS, DP), pad lanes 0
    out_ref[...] = (x1 + mlp).astype(out_ref.dtype)                      # residual 2, unmasked


# ---------------------------------- host-side packing (ONCE) ----------------------------------
def _pad_cols(a):
    return jnp.pad(a, ((0, 0), (0, DP - a.shape[1])))


def _pad_rows(a, rows):
    return jnp.pad(a, ((0, rows - a.shape[0]), (0, 0)))


def prepare_constants(params, mask):
    """Build the per-model constants ONCE (hoisted out of the per-call path):
       - consts_f32: (24, 128) f32  = combined additive mask + LN params + all biases
       - w_slab:     (416, 128) bf16 = [Wqkv | Wo | W1 | W2] weight slab
    """
    p = params
    # combined additive mask over the folded (B*S) row axis: user/causal mask inside each batch
    # block, -1e9 across batches so folded attention never mixes tokens from different batches.
    same_batch = (jnp.arange(BS)[:, None] // S) == (jnp.arange(BS)[None, :] // S)
    bigmask = jnp.where(same_batch, jnp.tile(mask[0, 0], (B, B)), jnp.float32(-1e9))
    bigmask_pad = jnp.pad(bigmask.astype(jnp.float32), ((0, 0), (0, DP - BS)))   # (BS, DP)

    bqkv = jnp.concatenate([p['bq'], p['bk'], p['bv']], axis=1)                  # (1, 3D)
    consts = jnp.concatenate([
        bigmask_pad,
        _pad_cols(p['ln1_g']), _pad_cols(p['ln1_b']),
        _pad_cols(p['ln2_g']), _pad_cols(p['ln2_b']),
        _pad_cols(bqkv), _pad_cols(p['bo']),
        _pad_cols(p['b1']), _pad_cols(p['b2']),
    ], axis=0).astype(jnp.float32)
    assert consts.shape == (CONST_ROWS, DP)

    wqkv = jnp.concatenate([p['wq'], p['wk'], p['wv']], axis=1)                  # (D, 3D)
    w_slab = jnp.concatenate([
        _pad_cols(_pad_rows(wqkv, DP)),        # WQKV_OFF (128 rows)
        _pad_cols(p['wo']),                    # WO_OFF   (D rows)
        _pad_cols(_pad_rows(p['w1'], DP)),     # W1_OFF   (128 rows)
        _pad_cols(p['w2']),                    # W2_OFF   (H rows)
    ], axis=0).astype(jnp.bfloat16)
    assert w_slab.shape == (W_ROWS, DP)
    return consts, w_slab


# ---------------------------------- wrapper ----------------------------------
_COST = pl.CostEstimate(flops=1_736_704, transcendentals=3_200, bytes_accessed=135_168)


@jax.jit
def transformer_block(x, consts_f32, w_slab_bf16):
    """x: (B, S, D) f32. consts_f32 / w_slab_bf16 from prepare_constants (built once)."""
    # fold batch+seq into one row axis; pad features to a lane-dense 128 columns (layout only)
    x_pad = jnp.pad(x.reshape(BS, D), ((0, 0), (0, DP - D)))

    y_pad = pl.pallas_call(
        block_kernel,
        out_shape=jax.ShapeDtypeStruct((BS, DP), jnp.float32),
        in_specs=[pl.BlockSpec(memory_space=pltpu.MemorySpace.VMEM)] * 3,
        out_specs=pl.BlockSpec(memory_space=pltpu.MemorySpace.VMEM),
        cost_estimate=_COST,
    )(x_pad, consts_f32, w_slab_bf16)

    return y_pad[:, :D].reshape(B, S, D)


# ---------------- pure-JAX f32 reference (same math, exact f32 matmuls) ----------------
def reference_block(x, mask, p):
    def ln(h, g, b):
        mu = jnp.mean(h, axis=-1, keepdims=True)
        var = jnp.mean((h - mu) ** 2, axis=-1, keepdims=True)
        return (h - mu) * jax.lax.rsqrt(var + EPS) * g + b

    h = ln(x, p['ln1_g'], p['ln1_b'])
    q = h @ p['wq'] + p['bq']
    k = h @ p['wk'] + p['bk']
    v = h @ p['wv'] + p['bv']
    q = q.reshape(B, S, NH, HD).transpose(0, 2, 1, 3)
    k = k.reshape(B, S, NH, HD).transpose(0, 2, 1, 3)
    v = v.reshape(B, S, NH, HD).transpose(0, 2, 1, 3)
    scores = jnp.einsum('bhqd,bhkd->bhqk', q, k) / math.sqrt(HD) + mask
    w = jax.nn.softmax(scores, axis=-1)
    attn = jnp.einsum('bhqk,bhkd->bhqd', w, v).transpose(0, 2, 1, 3).reshape(B, S, D)
    x = x + attn @ p['wo'] + p['bo']
    h2 = ln(x, p['ln2_g'], p['ln2_b'])
    z = _gelu(h2 @ p['w1'] + p['b1'])
    return x + z @ p['w2'] + p['b2']


def init_params(key):
    ks = jax.random.split(key, 8)
    scale = 0.02
    return {
        'ln1_g': jnp.ones((1, D), jnp.float32),
        'ln1_b': jnp.zeros((1, D), jnp.float32),
        'wq': scale * jax.random.normal(ks[0], (D, D), jnp.float32),
        'bq': jnp.zeros((1, D), jnp.float32),
        'wk': scale * jax.random.normal(ks[1], (D, D), jnp.float32),
        'bk': jnp.zeros((1, D), jnp.float32),
        'wv': scale * jax.random.normal(ks[2], (D, D), jnp.float32),
        'bv': jnp.zeros((1, D), jnp.float32),
        'wo': scale * jax.random.normal(ks[3], (D, D), jnp.float32),
        'bo': jnp.zeros((1, D), jnp.float32),
        'ln2_g': jnp.ones((1, D), jnp.float32),
        'ln2_b': jnp.zeros((1, D), jnp.float32),
        'w1': scale * jax.random.normal(ks[4], (D, H), jnp.float32),
        'b1': jnp.zeros((1, H), jnp.float32),
        'w2': scale * jax.random.normal(ks[5], (H, D), jnp.float32),
        'b2': jnp.zeros((1, D), jnp.float32),
    }


if __name__ == "__main__":
    key = jax.random.PRNGKey(0)
    kx, kp = jax.random.split(key)
    x = jax.random.normal(kx, (B, S, D), jnp.float32)

    # causal additive mask, shape (1, 1, S, S)
    causal = jnp.tril(jnp.ones((S, S), jnp.bool_))
    mask = jnp.where(causal, 0.0, -1e9).astype(jnp.float32)[None, None]

    params = init_params(kp)

    # Built ONCE, outside the per-call path (review item 1): bf16 weight slab + f32 mask/params.
    consts_f32, w_slab_bf16 = prepare_constants(params, mask)
    consts_f32 = jax.block_until_ready(consts_f32)
    w_slab_bf16 = jax.block_until_ready(w_slab_bf16)

    out = jax.block_until_ready(transformer_block(x, consts_f32, w_slab_bf16))
    ref = reference_block(x, mask, params)

    # Intentional numerical deltas vs. the exact f32 reference: bf16 MXU operands (weights /
    # activations cast for matmuls), E[x^2]-mu^2 LayerNorm variance, and the EUP approximate
    # reciprocal in softmax. All stay well within ~1e-3 at these magnitudes.
    np.testing.assert_allclose(np.asarray(out), np.asarray(ref), rtol=2e-3, atol=2e-3)

    print("KERNEL_OK")
</pallas_src>

<mosaic_0001>
module attributes {stable_mosaic.version = 11 : i64} {
  func.func @block_kernel(%arg0: memref<16x128xf32, #tpu.memory_space<vmem>>, %arg1: memref<24x128xf32, #tpu.memory_space<vmem>>, %arg2: memref<416x128xbf16, #tpu.memory_space<vmem>>, %arg3: memref<16x128xf32, #tpu.memory_space<vmem>>) attributes {dimension_semantics = [], scalar_prefetch = 0 : i64, scratch_operands = 0 : i64, tpu.core_type = #tpu.core_type<tc>} {
    %c0 = arith.constant 0 : index
    %c0_0 = arith.constant 0 : index
    %0 = vector.load %arg0[%c0, %c0_0] : memref<16x128xf32, #tpu.memory_space<vmem>>, vector<16x128xf32>
    %c0_1 = arith.constant 0 : index
    %c0_2 = arith.constant 0 : index
    %1 = vector.load %arg1[%c0_1, %c0_2] : memref<24x128xf32, #tpu.memory_space<vmem>>, vector<16x16xf32>
    %c16 = arith.constant 16 : index
    %c0_3 = arith.constant 0 : index
    %2 = vector.load %arg1[%c16, %c0_3] : memref<24x128xf32, #tpu.memory_space<vmem>>, vector<1x128xf32>
    %c17 = arith.constant 17 : index
    %c0_4 = arith.constant 0 : index
    %3 = vector.load %arg1[%c17, %c0_4] : memref<24x128xf32, #tpu.memory_space<vmem>>, vector<1x128xf32>
    %c18 = arith.constant 18 : index
    %c0_5 = arith.constant 0 : index
    %4 = vector.load %arg1[%c18, %c0_5] : memref<24x128xf32, #tpu.memory_space<vmem>>, vector<1x128xf32>
    %c19 = arith.constant 19 : index
    %c0_6 = arith.constant 0 : index
    %5 = vector.load %arg1[%c19, %c0_6] : memref<24x128xf32, #tpu.memory_space<vmem>>, vector<1x128xf32>
    %c20 = arith.constant 20 : index
    %c0_7 = arith.constant 0 : index
    %6 = vector.load %arg1[%c20, %c0_7] : memref<24x128xf32, #tpu.memory_space<vmem>>, vector<1x128xf32>
    %c21 = arith.constant 21 : index
    %c0_8 = arith.constant 0 : index
    %7 = vector.load %arg1[%c21, %c0_8] : memref<24x128xf32, #tpu.memory_space<vmem>>, vector<1x128xf32>
    %c22 = arith.constant 22 : index
    %c0_9 = arith.constant 0 : index
    %8 = vector.load %arg1[%c22, %c0_9] : memref<24x128xf32, #tpu.memory_space<vmem>>, vector<1x128xf32>
    %c23 = arith.constant 23 : index
    %c0_10 = arith.constant 0 : index
    %9 = vector.load %arg1[%c23, %c0_10] : memref<24x128xf32, #tpu.memory_space<vmem>>, vector<1x128xf32>
    %cst = arith.constant dense<0.000000e+00> : vector<16xf32>
    %10 = vector.multi_reduction <add>, %0, %cst [1] : vector<16x128xf32> to vector<16xf32>
    %11 = vector.shape_cast %10 : vector<16xf32> to vector<16x1xf32>
    %cst_11 = arith.constant 3.125000e-02 : f32
    %12 = vector.broadcast %cst_11 : f32 to vector<16x1xf32>
    %13 = arith.mulf %11, %12 : vector<16x1xf32>
    %14 = arith.mulf %0, %0 : vector<16x128xf32>
    %cst_12 = arith.constant dense<0.000000e+00> : vector<16xf32>
    %15 = vector.multi_reduction <add>, %14, %cst_12 [1] : vector<16x128xf32> to vector<16xf32>
    %16 = vector.shape_cast %15 : vector<16xf32> to vector<16x1xf32>
    %cst_13 = arith.constant 3.125000e-02 : f32
    %17 = vector.broadcast %cst_13 : f32 to vector<16x1xf32>
    %18 = arith.mulf %16, %17 : vector<16x1xf32>
    %19 = arith.mulf %13, %13 : vector<16x1xf32>
    %20 = arith.subf %18, %19 : vector<16x1xf32>
    %21 = vector.broadcast %13 : vector<16x1xf32> to vector<16x128xf32>
    %22 = arith.subf %0, %21 : vector<16x128xf32>
    %cst_14 = arith.constant 9.99999974E-6 : f32
    %23 = vector.broadcast %cst_14 : f32 to vector<16x1xf32>
    %24 = arith.addf %20, %23 : vector<16x1xf32>
    %25 = math.rsqrt %24 : vector<16x1xf32>
    %26 = vector.broadcast %25 : vector<16x1xf32> to vector<16x128xf32>
    %27 = arith.mulf %22, %26 : vector<16x128xf32>
    %28 = vector.broadcast %2 : vector<1x128xf32> to vector<16x128xf32>
    %29 = arith.mulf %27, %28 : vector<16x128xf32>
    %30 = vector.broadcast %3 : vector<1x128xf32> to vector<16x128xf32>
    %31 = arith.addf %29, %30 : vector<16x128xf32>
    %32 = arith.truncf %31 : vector<16x128xf32> to vector<16x128xbf16>
    %c0_15 = arith.constant 0 : index
    %c0_16 = arith.constant 0 : index
    %33 = vector.load %arg2[%c0_15, %c0_16] : memref<416x128xbf16, #tpu.memory_space<vmem>>, vector<128x128xbf16>
    %cst_17 = arith.constant dense<0.000000e+00> : vector<16x128xf32>
    %34 = tpu.matmul %32, %33, %cst_17 {dimension_numbers = #tpu.dot_dimension_numbers<[1], [0], [0], [1], [0, 0, 1, 1], [], []>} : vector<16x128xbf16>, vector<128x128xbf16>, vector<16x128xf32> -> vector<16x128xf32>
    %35 = vector.broadcast %6 : vector<1x128xf32> to vector<16x128xf32>
    %36 = arith.addf %34, %35 : vector<16x128xf32>
    %37 = vector.extract_strided_slice %36 {offsets = [0, 0], sizes = [16, 32], strides = [1, 1]} : vector<16x128xf32> to vector<16x32xf32>
    %38 = arith.truncf %37 : vector<16x32xf32> to vector<16x32xbf16>
    %39 = vector.extract_strided_slice %36 {offsets = [0, 32], sizes = [16, 32], strides = [1, 1]} : vector<16x128xf32> to vector<16x32xf32>
    %40 = tpu.transpose %39, [1, 0] : vector<16x32xf32> -> vector<32x16xf32>
    %41 = arith.truncf %40 : vector<32x16xf32> to vector<32x16xbf16>
    %42 = vector.extract_strided_slice %36 {offsets = [0, 64], sizes = [16, 32], strides = [1, 1]} : vector<16x128xf32> to vector<16x32xf32>
    %43 = arith.truncf %42 : vector<16x32xf32> to vector<16x32xbf16>
    %44 = vector.extract_strided_slice %38 {offsets = [0, 0], sizes = [16, 8], strides = [1, 1]} : vector<16x32xbf16> to vector<16x8xbf16>
    %45 = vector.extract_strided_slice %41 {offsets = [0, 0], sizes = [8, 16], strides = [1, 1]} : vector<32x16xbf16> to vector<8x16xbf16>
    %cst_18 = arith.constant dense<0.000000e+00> : vector<16x16xf32>
    %46 = tpu.matmul %44, %45, %cst_18 {dimension_numbers = #tpu.dot_dimension_numbers<[1], [0], [0], [1], [0, 0, 1, 1], [], []>} : vector<16x8xbf16>, vector<8x16xbf16>, vector<16x16xf32> -> vector<16x16xf32>
    %cst_19 = arith.constant 0.353553385 : f32
    %47 = vector.broadcast %cst_19 : f32 to vector<16x16xf32>
    %48 = arith.mulf %46, %47 : vector<16x16xf32>
    %49 = arith.addf %48, %1 : vector<16x16xf32>
    %cst_20 = arith.constant dense<0xFF800000> : vector<16xf32>
    %50 = vector.multi_reduction <maximumf>, %49, %cst_20 [1] : vector<16x16xf32> to vector<16xf32>
    %51 = vector.shape_cast %50 : vector<16xf32> to vector<16x1xf32>
    %52 = vector.broadcast %51 : vector<16x1xf32> to vector<16x16xf32>
    %53 = arith.subf %49, %52 : vector<16x16xf32>
    %54 = math.exp %53 : vector<16x16xf32>
    %cst_21 = arith.constant dense<0.000000e+00> : vector<16xf32>
    %55 = vector.multi_reduction <add>, %54, %cst_21 [1] : vector<16x16xf32> to vector<16xf32>
    %56 = vector.shape_cast %55 : vector<16xf32> to vector<16x1xf32>
    %57 = tpu.reciprocal %56 {approx = true} : vector<16x1xf32> -> vector<16x1xf32>
    %58 = vector.broadcast %57 : vector<16x1xf32> to vector<16x16xf32>
    %59 = arith.mulf %54, %58 : vector<16x16xf32>
    %60 = arith.truncf %59 : vector<16x16xf32> to vector<16x16xbf16>
    %61 = vector.extract_strided_slice %43 {offsets = [0, 0], sizes = [16, 8], strides = [1, 1]} : vector<16x32xbf16> to vector<16x8xbf16>
    %cst_22 = arith.constant dense<0.000000e+00> : vector<16x8xf32>
    %62 = tpu.matmul %60, %61, %cst_22 {dimension_numbers = #tpu.dot_dimension_numbers<[1], [0], [0], [1], [0, 0, 1, 1], [], []>} : vector<16x16xbf16>, vector<16x8xbf16>, vector<16x8xf32> -> vector<16x8xf32>
    %63 = vector.extract_strided_slice %38 {offsets = [0, 8], sizes = [16, 8], strides = [1, 1]} : vector<16x32xbf16> to vector<16x8xbf16>
    %64 = vector.extract_strided_slice %41 {offsets = [8, 0], sizes = [8, 16], strides = [1, 1]} : vector<32x16xbf16> to vector<8x16xbf16>
    %cst_23 = arith.constant dense<0.000000e+00> : vector<16x16xf32>
    %65 = tpu.matmul %63, %64, %cst_23 {dimension_numbers = #tpu.dot_dimension_numbers<[1], [0], [0], [1], [0, 0, 1, 1], [], []>} : vector<16x8xbf16>, vector<8x16xbf16>, vector<16x16xf32> -> vector<16x16xf32>
    %cst_24 = arith.constant 0.353553385 : f32
    %66 = vector.broadcast %cst_24 : f32 to vector<16x16xf32>
    %67 = arith.mulf %65, %66 : vector<16x16xf32>
    %68 = arith.addf %67, %1 : vector<16x16xf32>
    %cst_25 = arith.constant dense<0xFF800000> : vector<16xf32>
    %69 = vector.multi_reduction <maximumf>, %68, %cst_25 [1] : vector<16x16xf32> to vector<16xf32>
    %70 = vector.shape_cast %69 : vector<16xf32> to vector<16x1xf32>
    %71 = vector.broadcast %70 : vector<16x1xf32> to vector<16x16xf32>
    %72 = arith.subf %68, %71 : vector<16x16xf32>
    %73 = math.exp %72 : vector<16x16xf32>
    %cst_26 = arith.constant dense<0.000000e+00> : vector<16xf32>
    %74 = vector.multi_reduction <add>, %73, %cst_26 [1] : vector<16x16xf32> to vector<16xf32>
    %75 = vector.shape_cast %74 : vector<16xf32> to vector<16x1xf32>
    %76 = tpu.reciprocal %75 {approx = true} : vector<16x1xf32> -> vector<16x1xf32>
    %77 = vector.broadcast %76 : vector<16x1xf32> to vector<16x16xf32>
    %78 = arith.mulf %73, %77 : vector<16x16xf32>
    %79 = arith.truncf %78 : vector<16x16xf32> to vector<16x16xbf16>
    %80 = vector.extract_strided_slice %43 {offsets = [0, 8], sizes = [16, 8], strides = [1, 1]} : vector<16x32xbf16> to vector<16x8xbf16>
    %cst_27 = arith.constant dense<0.000000e+00> : vector<16x8xf32>
    %81 = tpu.matmul %79, %80, %cst_27 {dimension_numbers = #tpu.dot_dimension_numbers<[1], [0], [0], [1], [0, 0, 1, 1], [], []>} : vector<16x16xbf16>, vector<16x8xbf16>, vector<16x8xf32> -> vector<16x8xf32>
    %82 = vector.extract_strided_slice %38 {offsets = [0, 16], sizes = [16, 8], strides = [1, 1]} : vector<16x32xbf16> to vector<16x8xbf16>
    %83 = vector.extract_strided_slice %41 {offsets = [16, 0], sizes = [8, 16], strides = [1, 1]} : vector<32x16xbf16> to vector<8x16xbf16>
    %cst_28 = arith.constant dense<0.000000e+00> : vector<16x16xf32>
    %84 = tpu.matmul %82, %83, %cst_28 {dimension_numbers = #tpu.dot_dimension_numbers<[1], [0], [0], [1], [0, 0, 1, 1], [], []>} : vector<16x8xbf16>, vector<8x16xbf16>, vector<16x16xf32> -> vector<16x16xf32>
    %cst_29 = arith.constant 0.353553385 : f32
    %85 = vector.broadcast %cst_29 : f32 to vector<16x16xf32>
    %86 = arith.mulf %84, %85 : vector<16x16xf32>
    %87 = arith.addf %86, %1 : vector<16x16xf32>
    %cst_30 = arith.constant dense<0xFF800000> : vector<16xf32>
    %88 = vector.multi_reduction <maximumf>, %87, %cst_30 [1] : vector<16x16xf32> to vector<16xf32>
    %89 = vector.shape_cast %88 : vector<16xf32> to vector<16x1xf32>
    %90 = vector.broadcast %89 : vector<16x1xf32> to vector<16x16xf32>
    %91 = arith.subf %87, %90 : vector<16x16xf32>
    %92 = math.exp %91 : vector<16x16xf32>
    %cst_31 = arith.constant dense<0.000000e+00> : vector<16xf32>
    %93 = vector.multi_reduction <add>, %92, %cst_31 [1] : vector<16x16xf32> to vector<16xf32>
    %94 = vector.shape_cast %93 : vector<16xf32> to vector<16x1xf32>
    %95 = tpu.reciprocal %94 {approx = true} : vector<16x1xf32> -> vector<16x1xf32>
    %96 = vector.broadcast %95 : vector<16x1xf32> to vector<16x16xf32>
    %97 = arith.mulf %92, %96 : vector<16x16xf32>
    %98 = arith.truncf %97 : vector<16x16xf32> to vector<16x16xbf16>
    %99 = vector.extract_strided_slice %43 {offsets = [0, 16], sizes = [16, 8], strides = [1, 1]} : vector<16x32xbf16> to vector<16x8xbf16>
    %cst_32 = arith.constant dense<0.000000e+00> : vector<16x8xf32>
    %100 = tpu.matmul %98, %99, %cst_32 {dimension_numbers = #tpu.dot_dimension_numbers<[1], [0], [0], [1], [0, 0, 1, 1], [], []>} : vector<16x16xbf16>, vector<16x8xbf16>, vector<16x8xf32> -> vector<16x8xf32>
    %101 = vector.extract_strided_slice %38 {offsets = [0, 24], sizes = [16, 8], strides = [1, 1]} : vector<16x32xbf16> to vector<16x8xbf16>
    %102 = vector.extract_strided_slice %41 {offsets = [24, 0], sizes = [8, 16], strides = [1, 1]} : vector<32x16xbf16> to vector<8x16xbf16>
    %cst_33 = arith.constant dense<0.000000e+00> : vector<16x16xf32>
    %103 = tpu.matmul %101, %102, %cst_33 {dimension_numbers = #tpu.dot_dimension_numbers<[1], [0], [0], [1], [0, 0, 1, 1], [], []>} : vector<16x8xbf16>, vector<8x16xbf16>, vector<16x16xf32> -> vector<16x16xf32>
    %cst_34 = arith.constant 0.353553385 : f32
    %104 = vector.broadcast %cst_34 : f32 to vector<16x16xf32>
    %105 = arith.mulf %103, %104 : vector<16x16xf32>
    %106 = arith.addf %105, %1 : vector<16x16xf32>
    %cst_35 = arith.constant dense<0xFF800000> : vector<16xf32>
    %107 = vector.multi_reduction <maximumf>, %106, %cst_35 [1] : vector<16x16xf32> to vector<16xf32>
    %108 = vector.shape_cast %107 : vector<16xf32> to vector<16x1xf32>
    %109 = vector.broadcast %108 : vector<16x1xf32> to vector<16x16xf32>
    %110 = arith.subf %106, %109 : vector<16x16xf32>
    %111 = math.exp %110 : vector<16x16xf32>
    %cst_36 = arith.constant dense<0.000000e+00> : vector<16xf32>
    %112 = vector.multi_reduction <add>, %111, %cst_36 [1] : vector<16x16xf32> to vector<16xf32>
    %113 = vector.shape_cast %112 : vector<16xf32> to vector<16x1xf32>
    %114 = tpu.reciprocal %113 {approx = true} : vector<16x1xf32> -> vector<16x1xf32>
    %115 = vector.broadcast %114 : vector<16x1xf32> to vector<16x16xf32>
    %116 = arith.mulf %111, %115 : vector<16x16xf32>
    %117 = arith.truncf %116 : vector<16x16xf32> to vector<16x16xbf16>
    %118 = vector.extract_strided_slice %43 {offsets = [0, 24], sizes = [16, 8], strides = [1, 1]} : vector<16x32xbf16> to vector<16x8xbf16>
    %cst_37 = arith.constant dense<0.000000e+00> : vector<16x8xf32>
    %119 = tpu.matmul %117, %118, %cst_37 {dimension_numbers = #tpu.dot_dimension_numbers<[1], [0], [0], [1], [0, 0, 1, 1], [], []>} : vector<16x16xbf16>, vector<16x8xbf16>, vector<16x8xf32> -> vector<16x8xf32>
    %120 = tpu.concatenate %62, %81, %100, %119 in 1 : vector<16x8xf32>, vector<16x8xf32>, vector<16x8xf32>, vector<16x8xf32> -> vector<16x32xf32>
    %121 = arith.truncf %120 : vector<16x32xf32> to vector<16x32xbf16>
    %c128 = arith.constant 128 : index
    %c0_38 = arith.constant 0 : index
    %122 = vector.load %arg2[%c128, %c0_38] : memref<416x128xbf16, #tpu.memory_space<vmem>>, vector<32x128xbf16>
    %cst_39 = arith.constant dense<0.000000e+00> : vector<16x128xf32>
    %123 = tpu.matmul %121, %122, %cst_39 {dimension_numbers = #tpu.dot_dimension_numbers<[1], [0], [0], [1], [0, 0, 1, 1], [], []>} : vector<16x32xbf16>, vector<32x128xbf16>, vector<16x128xf32> -> vector<16x128xf32>
    %124 = arith.addf %0, %123 : vector<16x128xf32>
    %125 = vector.broadcast %7 : vector<1x128xf32> to vector<16x128xf32>
    %126 = arith.addf %124, %125 : vector<16x128xf32>
    %cst_40 = arith.constant dense<0.000000e+00> : vector<16xf32>
    %127 = vector.multi_reduction <add>, %126, %cst_40 [1] : vector<16x128xf32> to vector<16xf32>
    %128 = vector.shape_cast %127 : vector<16xf32> to vector<16x1xf32>
    %cst_41 = arith.constant 3.125000e-02 : f32
    %129 = vector.broadcast %cst_41 : f32 to vector<16x1xf32>
    %130 = arith.mulf %128, %129 : vector<16x1xf32>
    %131 = arith.mulf %126, %126 : vector<16x128xf32>
    %cst_42 = arith.constant dense<0.000000e+00> : vector<16xf32>
    %132 = vector.multi_reduction <add>, %131, %cst_42 [1] : vector<16x128xf32> to vector<16xf32>
    %133 = vector.shape_cast %132 : vector<16xf32> to vector<16x1xf32>
    %cst_43 = arith.constant 3.125000e-02 : f32
    %134 = vector.broadcast %cst_43 : f32 to vector<16x1xf32>
    %135 = arith.mulf %133, %134 : vector<16x1xf32>
    %136 = arith.mulf %130, %130 : vector<16x1xf32>
    %137 = arith.subf %135, %136 : vector<16x1xf32>
    %138 = vector.broadcast %130 : vector<16x1xf32> to vector<16x128xf32>
    %139 = arith.subf %126, %138 : vector<16x128xf32>
    %cst_44 = arith.constant 9.99999974E-6 : f32
    %140 = vector.broadcast %cst_44 : f32 to vector<16x1xf32>
    %141 = arith.addf %137, %140 : vector<16x1xf32>
    %142 = math.rsqrt %141 : vector<16x1xf32>
    %143 = vector.broadcast %142 : vector<16x1xf32> to vector<16x128xf32>
    %144 = arith.mulf %139, %143 : vector<16x128xf32>
    %145 = vector.broadcast %4 : vector<1x128xf32> to vector<16x128xf32>
    %146 = arith.mulf %144, %145 : vector<16x128xf32>
    %147 = vector.broadcast %5 : vector<1x128xf32> to vector<16x128xf32>
    %148 = arith.addf %146, %147 : vector<16x128xf32>
    %149 = arith.truncf %148 : vector<16x128xf32> to vector<16x128xbf16>
    %c160 = arith.constant 160 : index
    %c0_45 = arith.constant 0 : index
    %150 = vector.load %arg2[%c160, %c0_45] : memref<416x128xbf16, #tpu.memory_space<vmem>>, vector<128x128xbf16>
    %cst_46 = arith.constant dense<0.000000e+00> : vector<16x128xf32>
    %151 = tpu.matmul %149, %150, %cst_46 {dimension_numbers = #tpu.dot_dimension_numbers<[1], [0], [0], [1], [0, 0, 1, 1], [], []>} : vector<16x128xbf16>, vector<128x128xbf16>, vector<16x128xf32> -> vector<16x128xf32>
    %152 = vector.broadcast %8 : vector<1x128xf32> to vector<16x128xf32>
    %153 = arith.addf %151, %152 : vector<16x128xf32>
    %cst_47 = arith.constant 5.000000e-01 : f32
    %154 = vector.broadcast %cst_47 : f32 to vector<16x128xf32>
    %155 = arith.mulf %154, %153 : vector<16x128xf32>
    %cst_48 = arith.constant 4.471500e-02 : f32
    %156 = vector.broadcast %cst_48 : f32 to vector<16x128xf32>
    %157 = arith.mulf %156, %153 : vector<16x128xf32>
    %158 = arith.mulf %157, %153 : vector<16x128xf32>
    %159 = arith.mulf %158, %153 : vector<16x128xf32>
    %160 = arith.addf %153, %159 : vector<16x128xf32>
    %cst_49 = arith.constant 0.797884583 : f32
    %161 = vector.broadcast %cst_49 : f32 to vector<16x128xf32>
    %162 = arith.mulf %161, %160 : vector<16x128xf32>
    %163 = math.tanh %162 : vector<16x128xf32>
    %cst_50 = arith.constant 1.000000e+00 : f32
    %164 = vector.broadcast %cst_50 : f32 to vector<16x128xf32>
    %165 = arith.addf %164, %163 : vector<16x128xf32>
    %166 = arith.mulf %155, %165 : vector<16x128xf32>
    %167 = arith.truncf %166 : vector<16x128xf32> to vector<16x128xbf16>
    %c288 = arith.constant 288 : index
    %c0_51 = arith.constant 0 : index
    %168 = vector.load %arg2[%c288, %c0_51] : memref<416x128xbf16, #tpu.memory_space<vmem>>, vector<128x128xbf16>
    %cst_52 = arith.constant dense<0.000000e+00> : vector<16x128xf32>
    %169 = tpu.matmul %167, %168, %cst_52 {dimension_numbers = #tpu.dot_dimension_numbers<[1], [0], [0], [1], [0, 0, 1, 1], [], []>} : vector<16x128xbf16>, vector<128x128xbf16>, vector<16x128xf32> -> vector<16x128xf32>
    %170 = vector.broadcast %9 : vector<1x128xf32> to vector<16x128xf32>
    %171 = arith.addf %169, %170 : vector<16x128xf32>
    %172 = arith.addf %126, %171 : vector<16x128xf32>
    %c0_53 = arith.constant 0 : index
    %c0_54 = arith.constant 0 : index
    %173 = vector.load %arg3[%c0_53, %c0_54] : memref<16x128xf32, #tpu.memory_space<vmem>>, vector<16x128xf32>
    tpu.vector_store %arg3[%c0_53, %c0_54], %172 {strides = array<i32>} : memref<16x128xf32, #tpu.memory_space<vmem>>, vector<16x128xf32>,
    return
  }
}

</mosaic_0001>

<bundles_post_ra>
// kernel: transformer_block.1
= control target key start
LH: loop header
LB: loop body
LE: loop exit
PB: predicated region body
PF: predicated region fallthrough
CT: control target
= control target key end

     0   :  { %8 = vsyncpa [#allocation3], 0  ;;  %s1445_s12 = smov [#allocation2]   ;;  %s1687_s0 = inlined_call_operand.vmem [shape: f32[16,128], index: 0, kind: input, shape index: {}]   ;;  %s1688_s1 = inlined_call_operand.vmem [shape: f32[24,128], index: 1, kind: input, shape index: {}]   ;;  %s1689_s2 = inlined_call_operand.hbm [shape: bf16[416,128], index: 2, kind: input, shape index: {}]   ;;  %s1690_s3 = inlined_call_operand.vmem [shape: f32[16,128], index: 3, kind: output, shape index: {}]  }
   0x1   :  { %s18_s13 = sshll.u32 %s1445_s12, 4  ;;  %s1421_s16 = scalar_lea.hbm %s1689_s2, 3328  ;;  %s19_s13 = int_to_ptr.vmem [resolvable:$true] %s18_s13 }
   0x2   :  { %p1422_p0 = scmp.ne.s32.totalorder %s1689_s2, %s1421_s16  ;;  %p1425_p1 = scmp.lt.u32.totalorder %s1421_s16, %s1689_s2 }
   0x4   :  { %p1427_p2 = pnand %p1425_p1, %p1422_p0 }
   0x6   :  { %1430 = shalt.err (!%p1427_p2)
}
   0x7   :  { %s1431_s21 = scalar_lea.vmem %s19_s13, 3328  ;;  %p1436_p4 = scmp.lt.s32.totalorder %s19_s13, %s19_s13 }
   0x8   :  { %p1432_p3 = scmp.ne.s32.totalorder %s19_s13, %s1431_s21  ;;  %p1437_p5 = scmp.lt.s32.totalorder %s1431_s21, %s1431_s21 }
   0xa   :  { %p1438_p6 = por %p1437_p5, %p1436_p4 }
   0xc   :  { %p1439_p7 = pnand %p1438_p6, %p1432_p3 }
   0xe   :  { %1442 = shalt.err (!%p1439_p7)
}
   0xf   :  { %s1446_s22 = smov 64   ;;  %s1447_s23 = smov 4  }
  0x10   :  { %24 = dma.hbm_to_vmem [thread:$0]  %s1689_s2, 3328, %s19_s13, [#allocation3], %s1446_s22, %s1446_s22, %s1447_s23  }
  0x11   :  { %1443 = dma.done.wait [#allocation3], 3328  }
  0x12   :  { %1444 = vsyncadd [#allocation3], 4294963968  ;;  %v1448_v0 = vmov 0.0   ;;  %v1499_v1 = vld [vmem:[%s1687_s0] sm:$0xff]  ;;  %v1504_v2 = vld [vmem:[%s1687_s0 + $0x8] sm:$0xff]  ;;  %vm1449_vm0 = vmmov 0  }
  0x13   :  { %1205 = vmatprep.subr.bf16.mxu0 %v1448_v0  ;;  %1225 = vmatprep.subr.bf16.mxu1 %v1448_v0  ;;  %v47_v3 = vmul.f32 %v1499_v1, %v1499_v1  ;;  %v48_v4 = vmul.f32 %v1504_v2, %v1504_v2  ;;  %v1351_v5 = vld [vmem:[#allocation2] sm:$0xff]   ;;  %v1352_v6 = vld [vmem:[#allocation2 + $0x8] sm:$0xff]   ;;  %v1353_v7 = vld [vmem:[#allocation2 + $0x10] sm:$0xff]   ;;  %s1450_s7 = smov 96   ;;  %vm236_vm1 = vcmask 1043456   ;;  %vm232_vm2 = vcmask 64512  }
  0x14   :  { %41 = vadd.xlane.f32.xlu0 %v1499_v1  ;;  %1206 = vmatpush3.bf16.msra.mxu0 %v1351_v5  ;;  %v1354_v8 = vld [vmem:[#allocation2 + $0x18] sm:$0xff]   ;;  %v1355_v9 = vld [vmem:[#allocation2 + $0x20] sm:$0xff]   ;;  %v1356_v10 = vld [vmem:[#allocation2 + $0x28] sm:$0xff]   ;;  %vm285_vm3 = vcmask 130048   ;;  %s1451_s12 = smov 120   ;;  %s1452_s13 = smov 112  }
  0x15   :  { %49 = vadd.xlane.f32.xlu1 %v47_v3  ;;  %1207 = vmatprep.subr.bf16.mxu0 %v1448_v0  ;;  %v1357_v11 = vld [vmem:[#allocation2 + $0x30] sm:$0xff]   ;;  %v1358_v12 = vld [vmem:[#allocation2 + $0x38] sm:$0xff]   ;;  %v1553_v59 = vld [vmem:[%s1688_s1] sm:$0xff]  ;;  %s1453_s14 = smov 56   ;;  %s1454_s15 = smov 104   ;;  %vm758_vm4 = vcmask 195584  }
  0x16   :  { %1221 = vmatprep.mubr.msk.bf16.mxu0 %vm1449_vm0, %v1448_v0  ;;  %1227 = vmatprep.mubr.msk.bf16.mxu1 %vm1449_vm0, %v1448_v0  ;;  %v1116_v30 = vld [vmem:[%s1688_s1 + $0x10] ss:$0 sm:$0xff]  ;;  %v1117_v35 = vld [vmem:[%s1688_s1 + $0x11] ss:$0 sm:$0xff]  ;;  %v1118_v40 = vld [vmem:[%s1688_s1 + $0x14] ss:$0 sm:$0xff] }
  0x17   :  { %v1558_v63 = vld [vmem:[%s1688_s1 + $0x8] sm:$0xff]  ;;  %s1455_s16 = smov 48   ;;  %s1456_s17 = smov 8   ;;  %vm778_vm5 = vcmask 261120  }
  0x18   :  { %43 = vadd.xlane.f32.xlu0 %v1504_v2  ;;  %1208 = vmatpush3.bf16.msra.mxu0 %v1352_v6  ;;  %s1457_s18 = smov 40   ;;  %s1458_s19 = smov 16  }
  0x19   :  { %51 = vadd.xlane.f32.xlu1 %v48_v4  ;;  %1209 = vmatprep.subr.bf16.mxu0 %v1448_v0  ;;  %s1459_s20 = smov 24  }
  0x1c   :  { %1210 = vmatpush3.bf16.msra.mxu0 %v1353_v7 }
  0x1d   :  { %1211 = vmatprep.subr.bf16.mxu0 %v1448_v0 }
  0x20   :  { %1212 = vmatpush3.bf16.msra.mxu0 %v1354_v8 }
  0x21   :  { %1213 = vmatprep.subr.bf16.mxu0 %v1448_v0 }
  0x24   :  { %1214 = vmatpush3.bf16.msra.mxu0 %v1355_v9 }
  0x25   :  { %1215 = vmatprep.subr.bf16.mxu0 %v1448_v0 }
  0x28   :  { %1216 = vmatpush3.bf16.msra.mxu0 %v1356_v10 }
  0x29   :  { %1217 = vmatprep.subr.bf16.mxu0 %v1448_v0 }
  0x2c   :  { %1218 = vmatpush3.bf16.msra.mxu0 %v1357_v11 }
  0x2d   :  { %1219 = vmatprep.subr.bf16.mxu0 %v1448_v0 }
  0x30   :  { %1220 = vmatpush3.bf16.msra.mxu0 %v1358_v12 }
  0x31   :  { %1255 = vmatprep.subr.bf16.mxu0 %v1448_v0 }
  0xa1   :  { %v42_v13 = vpop.xlane.xlu0 %41 }
  0xa2   :  { %v45_v14 = vmul.f32 0.03125, %v42_v13  ;;  %v50_v15 = vpop.xlane.xlu1 %49 }
  0xa3   :  { %v53_v17 = vmul.f32 0.03125, %v50_v15 }
  0xa4   :  { %v55_v16 = vmul.f32 %v45_v14, %v45_v14  ;;  %v59_v27 = vsub.f32 %v1499_v1, %v45_v14 }
  0xa5   :  { %v44_v18 = vpop.xlane.xlu0 %43 }
  0xa6   :  { %v57_v19 = vsub.f32 %v53_v17, %v55_v16  ;;  %v46_v20 = vmul.f32 0.03125, %v44_v18  ;;  %v52_v21 = vpop.xlane.xlu1 %51 }
  0xa7   :  { %v54_v24 = vmul.f32 0.03125, %v52_v21 }
  0xa8   :  { %v61_v22 = vadd.f32 1e-05, %v57_v19  ;;  %v56_v23 = vmul.f32 %v46_v20, %v46_v20  ;;  %v60_v31 = vsub.f32 %v1504_v2, %v46_v20 }
  0xaa   :  { %1377 = vrsqrt.f32 %v61_v22  ;;  %v58_v25 = vsub.f32 %v54_v24, %v56_v23 }
  0xac   :  { %v62_v26 = vadd.f32 1e-05, %v58_v25 }
  0xae   :  { %1379 = vrsqrt.f32 %v62_v26 }
  0xb4   :  { %v1378_v28 = vpop.eup %1377 }
  0xb5   :  { %v65_v29 = vmul.f32 %v1378_v28, %v59_v27 }
  0xb7   :  { %v71_v34 = vmul.f32 %v1116_v30, %v65_v29 }
  0xb8   :  { %v1380_v32 = vpop.eup %1379 }
  0xb9   :  { %v66_v33 = vmul.f32 %v1380_v32, %v60_v31  ;;  %v77_v37 = vadd.f32 %v1117_v35, %v71_v34 }
  0xbb   :  { %v72_v36 = vmul.f32 %v1116_v30, %v66_v33 }
  0xbd   :  { %v78_v38 = vadd.f32 %v1117_v35, %v72_v36 }
  0xbf   :  { %v79_v39 = vpack.c.bf16 %v78_v38, %v77_v37 }
  0xc1   :  { %1222 = vmatmul.mubr.bf16.vlgmr.msra.gmra.mrb[0].mxu0 %v79_v39 }
  0xc2   :  { %1257 = vmatprep.mubr.msk.bf16.mxu0 %vm1449_vm0, %v1448_v0 }
 0x194   :  { %v182_v41 = vpop.f32.mrb[0].mxu0 }
 0x195   :  { %v183_v42 = vadd.f32 %v1118_v40, %v182_v41  ;;  %v1223_v43 = vpop.f32.mrb[1].mxu0 }
 0x196   :  { %v185_v44 = vpop.f32.mrb[2].mxu0 }
 0x197   :  { %v186_v45 = vadd.f32 %v1118_v40, %v185_v44  ;;  %192 = vrot.lane.b32.xlu0 %v183_v42, %s1450_s7  ;;  %v1224_v46 = vpop.f32.mrb[3].mxu0 }
 0x199   :  { %v1537_v47 = vpack.c.bf16 %v186_v45, %v183_v42  ;;  %194 = vrot.lane.b32.xlu1 %v186_v45, %s1450_s7 }
 0x209   :  { %v193_v48 = vpop.permute.xlu0 %192 }
 0x20a   :  { %198 = vxpose.xlu1.b32.start [1/2] (short) (narrow) %v193_v48, 32 }
 0x20b   :  { %v195_v49 = vpop.permute.xlu1 %194 }
 0x20e   :  { %199 = vxpose.xlu1.b32.end [2/2] (short) (narrow) %v195_v49, 32 }
 0x234   :  { %310 = vrot.lane.b32.xlu1 %v1537_v47, %s1446_s22 }
 0x28a   :  { %v214_v50 = vpop.trf.xlu1 }
 0x28e   :  { %v215_v51 = vpop.trf.xlu1 }
 0x28f   :  { %v230_v52 = vpack.c.bf16 %v215_v51, %v214_v50 }
 0x291   :  { %v238_v53 = vsel %vm236_vm1, %v230_v52, 0  ;;  %v360_v23 = vrot.slane %v230_v52, 4 }
 0x292   :  { %1226 = vmatpush3.bf16.msra.mxu1 %v238_v53  ;;  %v216_v54 = vpop.trf.xlu1 }
 0x293   :  { %1231 = vmatprep.subr.bf16.mxu1 %v1448_v0  ;;  %v365_v27 = vsel %vm236_vm1, %v360_v23, 0 }
 0x295   :  { %1228 = vmatmul.mubr.msk.bf16.vlgmr.msra.gmra.mrb[0].mxu1 %vm232_vm2, %v1537_v47 }
 0x296   :  { %v217_v55 = vpop.trf.xlu1  ;;  %1233 = vmatprep.mubr.msk.bf16.mxu1 %vm1449_vm0, %v1448_v0 }
 0x297   :  { %v1547_v56 = vpack.c.bf16 %v217_v55, %v216_v54 }
 0x2a6   :  { %v311_v57 = vpop.permute.xlu1 %310 }
 0x2a7   :  { %1232 = vmatpush3.bf16.msra.mxu1 %v311_v57 }
 0x2a8   :  { %1237 = vmatprep.subr.bf16.mxu1 %v1448_v0 }
 0x368   :  { %v274_v58 = vpop.f32.mrb[0].mxu1 }
 0x369   :  { %v281_v60 = vmul.f32 0.35355338, %v274_v58  ;;  %v1229_v61 = vpop.f32.mrb[1].mxu1 }
 0x36a   :  { %v277_v62 = vpop.f32.mrb[2].mxu1 }
 0x36b   :  { %v282_v3 = vmul.f32 0.35355338, %v277_v62  ;;  %v1230_v4 = vpop.f32.mrb[3].mxu1  ;;  %v283_v5 = vadd.f32 %v281_v60, %v1553_v59 }
 0x36c   :  { %v488_v4 = vsel %vm236_vm1, %v1547_v56, 0 }
 0x36d   :  { %v286_v6 = vsel %vm285_vm3, %v283_v5, -inf  ;;  %v284_v7 = vadd.f32 %v282_v3, %v1558_v63 }
 0x36e   :  { %287 = vmax.xlane.f32.xlu0 %v286_v6 }
 0x36f   :  { %v289_v8 = vsel %vm285_vm3, %v284_v7, -inf }
 0x372   :  { %290 = vmax.xlane.f32.xlu0 %v289_v8 }
 0x3fb   :  { %v288_v9 = vpop.xlane.xlu0 %287 }
 0x3fc   :  { %v292_v10 = vsub.f32 %v283_v5, %v288_v9  ;;  %v608_v5 = vrot.slane %v1547_v56, 4 }
 0x3fe   :  { %v294_v11 = vmul.f32 1.442695, %v292_v10 }
 0x3ff   :  { %v291_v12 = vpop.xlane.xlu0 %290 }
 0x400   :  { %1381 = vpow2.f32 %v294_v11  ;;  %v293_v13 = vsub.f32 %v284_v7, %v291_v12  ;;  %v613_v7 = vsel %vm236_vm1, %v608_v5, 0 }
 0x402   :  { %v296_v14 = vmul.f32 1.442695, %v293_v13 }
 0x404   :  { %1383 = vpow2.f32 %v296_v14 }
 0x40a   :  { %v1382_v15 = vpop.eup %1381 }
 0x40b   :  { %v298_v16 = vsel %vm285_vm3, %v1382_v15, 0.0 }
 0x40c   :  { %299 = vadd.xlane.f32.xlu0 %v298_v16 }
 0x40e   :  { %v1384_v17 = vpop.eup %1383 }
 0x40f   :  { %v301_v18 = vsel %vm285_vm3, %v1384_v17, 0.0 }
 0x410   :  { %302 = vadd.xlane.f32.xlu0 %v301_v18 }
 0x426   :  { %357 = vrot.lane.b32.xlu0 %v1537_v47, %s1451_s12 }
 0x499   :  { %v300_v19 = vpop.xlane.xlu0 %299 }
 0x49a   :  { %1385 = vrcp.f32 %v300_v19 }
 0x49d   :  { %v303_v20 = vpop.xlane.xlu0 %302 }
 0x49e   :  { %1387 = vrcp.f32 %v303_v20 }
 0x4a1   :  { %v358_v28 = vpop.permute.xlu0 %357 }
 0x4a4   :  { %v1386_v21 = vpop.eup %1385 }
 0x4a5   :  { %v306_v24 = vmul.f32 %v1386_v21, %v1382_v15 }
 0x4a8   :  { %v1388_v22 = vpop.eup %1387 }
 0x4a9   :  { %v307_v25 = vmul.f32 %v1388_v22, %v1384_v17 }
 0x4ab   :  { %v308_v26 = vpack.c.bf16 %v307_v25, %v306_v24 }
 0x4ad   :  { %1234 = vmatmul.mubr.msk.bf16.vlgmr.msra.gmra.mrb[4].mxu1 %vm285_vm3, %v308_v26 }
 0x4ae   :  { %1238 = vmatpush3.bf16.msra.mxu1 %v365_v27  ;;  %1239 = vmatprep.mubr.msk.bf16.mxu1 %vm1449_vm0, %v1448_v0 }
 0x4af   :  { %1243 = vmatprep.subr.bf16.mxu1 %v1448_v0 }
 0x4b5   :  { %1240 = vmatmul.mubr.msk.bf16.vlgmr.msra.gmra.mrb[8].mxu1 %vm232_vm2, %v358_v28 }
 0x4b6   :  { %1245 = vmatprep.mubr.msk.bf16.mxu1 %vm1449_vm0, %v1448_v0 }
 0x580   :  { %v1575_v29 = vpop.f32.mrb[4].mxu1 }
 0x581   :  { %v1235_v30 = vpop.f32.mrb[5].mxu1 }
 0x582   :  { %v1577_v31 = vpop.f32.mrb[6].mxu1 }
 0x583   :  { %v1236_v32 = vpop.f32.mrb[7].mxu1 }
 0x588   :  { %v401_v33 = vpop.f32.mrb[8].mxu1 }
 0x589   :  { %v408_v34 = vmul.f32 0.35355338, %v401_v33  ;;  %v1241_v35 = vpop.f32.mrb[9].mxu1 }
 0x58a   :  { %v404_v36 = vpop.f32.mrb[10].mxu1 }
 0x58b   :  { %v409_v37 = vmul.f32 0.35355338, %v404_v36  ;;  %v1242_v38 = vpop.f32.mrb[11].mxu1  ;;  %v410_v39 = vadd.f32 %v408_v34, %v1553_v59 }
 0x58d   :  { %v412_v40 = vsel %vm285_vm3, %v410_v39, -inf  ;;  %v411_v41 = vadd.f32 %v409_v37, %v1558_v63 }
 0x58e   :  { %413 = vmax.xlane.f32.xlu0 %v412_v40 }
 0x58f   :  { %v415_v42 = vsel %vm285_vm3, %v411_v41, -inf }
 0x590   :  { %416 = vmax.xlane.f32.xlu1 %v415_v42 }
 0x5a1   :  { %482 = vrot.lane.b32.xlu1 %v1537_v47, %s1452_s13 }
 0x61b   :  { %v414_v43 = vpop.xlane.xlu0 %413 }
 0x61c   :  { %v418_v44 = vsub.f32 %v410_v39, %v414_v43 }
 0x61d   :  { %v417_v45 = vpop.xlane.xlu1 %416 }
 0x61e   :  { %v420_v46 = vmul.f32 1.442695, %v418_v44  ;;  %v419_v48 = vsub.f32 %v411_v41, %v417_v45 }
 0x620   :  { %1389 = vpow2.f32 %v420_v46  ;;  %v422_v49 = vmul.f32 1.442695, %v419_v48 }
 0x621   :  { %v483_v6 = vpop.permute.xlu1 %482 }
 0x622   :  { %1391 = vpow2.f32 %v422_v49 }
 0x62a   :  { %v1390_v50 = vpop.eup %1389 }
 0x62b   :  { %v424_v51 = vsel %vm285_vm3, %v1390_v50, 0.0 }
 0x62c   :  { %v1392_v52 = vpop.eup %1391  ;;  %425 = vadd.xlane.f32.xlu0 %v424_v51 }
 0x62d   :  { %v427_v53 = vsel %vm285_vm3, %v1392_v52, 0.0 }
 0x630   :  { %428 = vadd.xlane.f32.xlu0 %v427_v53 }
 0x646   :  { %435 = vrot.lane.b32.xlu0 %v1537_v47, %s1453_s14 }
 0x64a   :  { %605 = vrot.lane.b32.xlu0 %v1537_v47, %s1454_s15 }
 0x6b9   :  { %v426_v54 = vpop.xlane.xlu0 %425 }
 0x6ba   :  { %1393 = vrcp.f32 %v426_v54 }
 0x6bd   :  { %v429_v55 = vpop.xlane.xlu0 %428 }
 0x6be   :  { %1395 = vrcp.f32 %v429_v55 }
 0x6c1   :  { %v436_v57 = vpop.permute.xlu0 %435 }
 0x6c2   :  { %1244 = vmatpush3.bf16.msra.mxu1 %v436_v57 }
 0x6c3   :  { %1249 = vmatprep.subr.bf16.mxu1 %v1448_v0 }
 0x6c4   :  { %v1394_v58 = vpop.eup %1393 }
 0x6c5   :  { %v432_v61 = vmul.f32 %v1394_v58, %v1390_v50  ;;  %v606_v8 = vpop.permute.xlu0 %605 }
 0x6c8   :  { %v1396_v60 = vpop.eup %1395 }
 0x6c9   :  { %v433_v62 = vmul.f32 %v1396_v60, %v1392_v52 }
 0x6cb   :  { %v434_v3 = vpack.c.bf16 %v433_v62, %v432_v61 }
 0x6cd   :  { %1246 = vmatmul.mubr.msk.bf16.vlgmr.msra.gmra.mrb[12].mxu1 %vm285_vm3, %v434_v3 }
 0x6ce   :  { %1250 = vmatpush3.bf16.msra.mxu1 %v488_v4  ;;  %1251 = vmatprep.mubr.msk.bf16.mxu1 %vm1449_vm0, %v1448_v0 }
 0x6cf   :  { %1261 = vmatprep.subr.bf16.mxu1 %v1448_v0 }
 0x6d5   :  { %1252 = vmatmul.mubr.msk.bf16.vlgmr.msra.gmra.mrb[16].mxu1 %vm232_vm2, %v483_v6 }
 0x6d6   :  { %1262 = vmatpush3.bf16.msra.mxu1 %v613_v7  ;;  %1263 = vmatprep.mubr.msk.bf16.mxu1 %vm1449_vm0, %v1448_v0 }
 0x6d7   :  { %1273 = vmatprep.subr.bf16.mxu1 %v1448_v0 }
 0x6dd   :  { %1264 = vmatmul.mubr.msk.bf16.vlgmr.msra.gmra.mrb[20].mxu1 %vm232_vm2, %v606_v8 }
 0x6de   :  { %1277 = vmatprep.mubr.msk.bf16.mxu1 %vm1449_vm0, %v1448_v0 }
 0x7a0   :  { %v475_v9 = vpop.f32.mrb[12].mxu1 }
 0x7a1   :  { %v1247_v10 = vpop.f32.mrb[13].mxu1 }
 0x7a2   :  { %v478_v56 = vpop.f32.mrb[14].mxu1 }
 0x7a3   :  { %v1336_v11 = vpack.i.bf16 %v478_v56, %v475_v9  ;;  %v1248_v12 = vpop.f32.mrb[15].mxu1  ;;  %v1359_v56 = vld [vmem:[#allocation2 + $0x40] sm:$0xff]  }
 0x7a4   :  { %1274 = vmatpush3.bf16.msra.mxu1 %v1359_v56  ;;  %v1139_v56 = vld [vmem:[%s1688_s1 + $0x12] ss:$0 sm:$0xff] }
 0x7a5   :  { %1275 = vmatprep.subr.bf16.mxu1 %v1448_v0 }
 0x7a8   :  { %v524_v13 = vpop.f32.mrb[16].mxu1 }
 0x7a9   :  { %v531_v14 = vmul.f32 0.35355338, %v524_v13  ;;  %v1253_v15 = vpop.f32.mrb[17].mxu1 }
 0x7aa   :  { %v527_v16 = vpop.f32.mrb[18].mxu1 }
 0x7ab   :  { %v532_v17 = vmul.f32 0.35355338, %v527_v16  ;;  %v1254_v18 = vpop.f32.mrb[19].mxu1  ;;  %v533_v19 = vadd.f32 %v531_v14, %v1553_v59  ;;  %v1360_v16 = vld [vmem:[#allocation2 + $0x48] sm:$0xff]  }
 0x7ac   :  { %1276 = vmatpush3.bf16.msra.mxu1 %v1360_v16  ;;  %v1140_v16 = vld [vmem:[%s1688_s1 + $0x13] ss:$0 sm:$0xff] }
 0x7ad   :  { %v535_v20 = vsel %vm285_vm3, %v533_v19, -inf  ;;  %v534_v21 = vadd.f32 %v532_v17, %v1558_v63  ;;  %1301 = vmatprep.subr.bf16.mxu1 %v1448_v0 }
 0x7ae   :  { %536 = vmax.xlane.f32.xlu0 %v535_v20 }
 0x7af   :  { %v538_v22 = vsel %vm285_vm3, %v534_v21, -inf }
 0x7b0   :  { %539 = vmax.xlane.f32.xlu1 %v538_v22  ;;  %v649_v23 = vpop.f32.mrb[20].mxu1 }
 0x7b1   :  { %v656_v24 = vmul.f32 0.35355338, %v649_v23  ;;  %v1265_v25 = vpop.f32.mrb[21].mxu1 }
 0x7b2   :  { %v652_v26 = vpop.f32.mrb[22].mxu1 }
 0x7b3   :  { %v657_v27 = vmul.f32 0.35355338, %v652_v26  ;;  %v1266_v28 = vpop.f32.mrb[23].mxu1  ;;  %v658_v30 = vadd.f32 %v656_v24, %v1553_v59 }
 0x7b5   :  { %v660_v32 = vsel %vm285_vm3, %v658_v30, -inf  ;;  %v659_v33 = vadd.f32 %v657_v27, %v1558_v63 }
 0x7b6   :  { %661 = vmax.xlane.f32.xlu0 %v660_v32 }
 0x7b7   :  { %v663_v34 = vsel %vm285_vm3, %v659_v33, -inf }
 0x7ba   :  { %664 = vmax.xlane.f32.xlu0 %v663_v34 }
 0x83b   :  { %v537_v35 = vpop.xlane.xlu0 %536 }
 0x83c   :  { %v541_v36 = vsub.f32 %v533_v19, %v537_v35 }
 0x83d   :  { %v540_v37 = vpop.xlane.xlu1 %539 }
 0x83e   :  { %v543_v38 = vmul.f32 1.442695, %v541_v36  ;;  %v542_v39 = vsub.f32 %v534_v21, %v540_v37 }
 0x840   :  { %1397 = vpow2.f32 %v543_v38  ;;  %v545_v40 = vmul.f32 1.442695, %v542_v39 }
 0x842   :  { %1399 = vpow2.f32 %v545_v40 }
 0x843   :  { %v662_v41 = vpop.xlane.xlu0 %661 }
 0x844   :  { %v666_v42 = vsub.f32 %v658_v30, %v662_v41 }
 0x846   :  { %v668_v43 = vmul.f32 1.442695, %v666_v42 }
 0x847   :  { %v665_v59 = vpop.xlane.xlu0 %664 }
 0x848   :  { %1401 = vpow2.f32 %v668_v43  ;;  %v667_v44 = vsub.f32 %v659_v33, %v665_v59 }
 0x84a   :  { %v1398_v45 = vpop.eup %1397  ;;  %v670_v63 = vmul.f32 1.442695, %v667_v44 }
 0x84b   :  { %v547_v46 = vsel %vm285_vm3, %v1398_v45, 0.0 }
 0x84c   :  { %v1400_v48 = vpop.eup %1399  ;;  %1403 = vpow2.f32 %v670_v63  ;;  %548 = vadd.xlane.f32.xlu1 %v547_v46  ;;  %v1361_v46 = vld [vmem:[#allocation2 + $0x50] sm:$0xff]  }
 0x84d   :  { %v550_v49 = vsel %vm285_vm3, %v1400_v48, 0.0 }
 0x84e   :  { %551 = vadd.xlane.f32.xlu0 %v550_v49  ;;  %v1364_v49 = vld [vmem:[#allocation2 + $0x68] sm:$0xff]  }
 0x852   :  { %v1402_v50 = vpop.eup %1401 }
 0x853   :  { %v672_v51 = vsel %vm285_vm3, %v1402_v50, 0.0 }
 0x854   :  { %673 = vadd.xlane.f32.xlu1 %v672_v51  ;;  %v1366_v51 = vld [vmem:[#allocation2 + $0x78] sm:$0xff]  }
 0x856   :  { %v1404_v52 = vpop.eup %1403 }
 0x857   :  { %v675_v53 = vsel %vm285_vm3, %v1404_v52, 0.0 }
 0x858   :  { %676 = vadd.xlane.f32.xlu0 %v675_v53  ;;  %v1368_v53 = vld [vmem:[#allocation2 + $0x88] sm:$0xff]  }
 0x865   :  { %558 = vrot.lane.b32.xlu1 %v1537_v47, %s1455_s16 }
 0x869   :  { %1337 = vrot.lane.b32.xlu1 %v1336_v11, %s1456_s17 }
 0x86e   :  { %683 = vrot.lane.b32.xlu0 %v1537_v47, %s1457_s18 }
 0x8d9   :  { %v549_v54 = vpop.xlane.xlu1 %548 }
 0x8da   :  { %1405 = vrcp.f32 %v549_v54 }
 0x8db   :  { %v552_v55 = vpop.xlane.xlu0 %551 }
 0x8dc   :  { %1407 = vrcp.f32 %v552_v55 }
 0x8e1   :  { %v674_v57 = vpop.xlane.xlu1 %673 }
 0x8e2   :  { %1409 = vrcp.f32 %v674_v57 }
 0x8e4   :  { %v1406_v58 = vpop.eup %1405 }
 0x8e5   :  { %v559_v60 = vpop.permute.xlu1 %558  ;;  %v677_v61 = vpop.xlane.xlu0 %676  ;;  %v555_v3 = vmul.f32 %v1406_v58, %v1398_v45 }
 0x8e6   :  { %v1408_v62 = vpop.eup %1407  ;;  %1411 = vrcp.f32 %v677_v61  ;;  %1256 = vmatpush3.bf16.msra.mxu0 %v559_v60 }
 0x8e7   :  { %v556_v4 = vmul.f32 %v1408_v62, %v1400_v48  ;;  %1267 = vmatprep.subr.bf16.mxu0 %v1448_v0  ;;  %v1363_v48 = vld [vmem:[#allocation2 + $0x60] sm:$0xff]  }
 0x8e9   :  { %v684_v5 = vpop.permute.xlu0 %683  ;;  %v557_v6 = vpack.c.bf16 %v556_v4, %v555_v3  ;;  %v1338_v22 = vpop.permute.xlu1 %1337 }
 0x8ea   :  { %v1340_v24 = vunpack.i.h.bf16 %v1338_v22  ;;  %v1339_v25 = vunpack.i.l.bf16 %v1338_v22  ;;  %v1370_v22 = vld [vmem:[#allocation2 + $0x98] sm:$0xff]  }
 0x8eb   :  { %1258 = vmatmul.mubr.msk.bf16.vlgmr.msra.gmra.mrb[4].mxu0 %vm285_vm3, %v557_v6 }
 0x8ec   :  { %1268 = vmatpush3.bf16.msra.mxu0 %v684_v5  ;;  %1269 = vmatprep.mubr.msk.bf16.mxu0 %vm1449_vm0, %v1448_v0  ;;  %v1410_v47 = vpop.eup %1409  ;;  %v755_v30 = vsel %vm232_vm2, %v1577_v31, %v1340_v24  ;;  %v754_v32 = vsel %vm232_vm2, %v1575_v29, %v1339_v25  ;;  %v1138_v31 = vld [vmem:[%s1688_s1 + $0x15] ss:$0 sm:$0xff]  ;;  %v1372_v24 = vld [vmem:[#allocation2 + $0xa8] sm:$0xff]  }
 0x8ed   :  { %1281 = vmatprep.subr.bf16.mxu0 %v1448_v0  ;;  %v680_v8 = vmul.f32 %v1410_v47, %v1402_v50  ;;  %v1365_v50 = vld [vmem:[#allocation2 + $0x70] sm:$0xff]  }
 0x8ee   :  { %v1373_v25 = vld [vmem:[#allocation2 + $0xb0] sm:$0xff]  }
 0x8f0   :  { %v1412_v7 = vpop.eup %1411 }
 0x8f1   :  { %v681_v9 = vmul.f32 %v1412_v7, %v1404_v52  ;;  %v1367_v52 = vld [vmem:[#allocation2 + $0x80] sm:$0xff]  }
 0x8f3   :  { %v682_v10 = vpack.c.bf16 %v681_v9, %v680_v8 }
 0x8f5   :  { %1270 = vmatmul.mubr.msk.bf16.vlgmr.msra.gmra.mrb[8].mxu0 %vm285_vm3, %v682_v10 }
 0x8f6   :  { %1297 = vmatprep.mubr.msk.bf16.mxu0 %vm1449_vm0, %v1448_v0  ;;  %1282 = vmatpush3.bf16.msra.mxu0 %v1361_v46 }
 0x8f7   :  { %1283 = vmatprep.subr.bf16.mxu0 %v1448_v0 }
 0x9be   :  { %v598_v11 = vpop.f32.mrb[4].mxu0 }
 0x9bf   :  { %v1259_v12 = vpop.f32.mrb[5].mxu0 }
 0x9c0   :  { %v601_v13 = vpop.f32.mrb[6].mxu0 }
 0x9c1   :  { %v1341_v14 = vpack.i.bf16 %v601_v13, %v598_v11  ;;  %v1260_v15 = vpop.f32.mrb[7].mxu0 }
 0x9c3   :  { %1342 = vrot.lane.b32.xlu1 %v1341_v14, %s1458_s19 }
 0x9c8   :  { %v723_v17 = vpop.f32.mrb[8].mxu0 }
 0x9c9   :  { %v1271_v18 = vpop.f32.mrb[9].mxu0 }
 0x9ca   :  { %v726_v19 = vpop.f32.mrb[10].mxu0 }
 0x9cb   :  { %v1346_v20 = vpack.i.bf16 %v726_v19, %v723_v17  ;;  %v1272_v21 = vpop.f32.mrb[11].mxu0 }
 0x9cc   :  { %v1369_v21 = vld [vmem:[#allocation2 + $0x90] sm:$0xff]  }
 0x9cd   :  { %1347 = vrot.lane.b32.xlu0 %v1346_v20, %s1459_s20 }
 0xa35   :  { %v1343_v23 = vpop.permute.xlu1 %1342 }
 0xa36   :  { %v1345_v26 = vunpack.i.h.bf16 %v1343_v23  ;;  %v1344_v27 = vunpack.i.l.bf16 %v1343_v23  ;;  %v1371_v23 = vld [vmem:[#allocation2 + $0xa0] sm:$0xff]  }
 0xa38   :  { %v757_v35 = vsel %vm285_vm3, %v755_v30, %v1345_v26  ;;  %v756_v36 = vsel %vm285_vm3, %v754_v32, %v1344_v27  ;;  %v1374_v26 = vld [vmem:[#allocation2 + $0xb8] sm:$0xff]   ;;  %v1375_v27 = vld [vmem:[#allocation2 + $0xc0] sm:$0xff]   ;;  %v1141_v30 = vld [vmem:[%s1688_s1 + $0x16] ss:$0 sm:$0xff] }
 0xa3f   :  { %v1348_v28 = vpop.permute.xlu0 %1347 }
 0xa40   :  { %v1350_v33 = vunpack.i.h.bf16 %v1348_v28  ;;  %v1349_v34 = vunpack.i.l.bf16 %v1348_v28  ;;  %v1376_v28 = vld [vmem:[#allocation2 + $0xc8] sm:$0xff]  }
 0xa42   :  { %v760_v37 = vsel %vm758_vm4, %v757_v35, %v1350_v33  ;;  %v759_v38 = vsel %vm758_vm4, %v756_v36, %v1349_v34 }
 0xa43   :  { %v761_v39 = vpack.c.bf16 %v760_v37, %v759_v38 }
 0xa45   :  { %1278 = vmatmul.mubr.msk.bf16.vlgmr.msra.gmra.mrb[24].mxu1 %vm778_vm5, %v761_v39 }
 0xa46   :  { %1317 = vmatprep.mubr.msk.bf16.mxu1 %vm1449_vm0, %v1448_v0  ;;  %1302 = vmatpush3.bf16.msra.mxu1 %v1369_v21 }
 0xa47   :  { %1303 = vmatprep.subr.bf16.mxu1 %v1448_v0 }
 0xa4a   :  { %1304 = vmatpush3.bf16.msra.mxu1 %v1370_v22 }
 0xa4b   :  { %1305 = vmatprep.subr.bf16.mxu1 %v1448_v0 }
 0xa4e   :  { %1306 = vmatpush3.bf16.msra.mxu1 %v1371_v23 }
 0xa4f   :  { %1307 = vmatprep.subr.bf16.mxu1 %v1448_v0 }
 0xa52   :  { %1308 = vmatpush3.bf16.msra.mxu1 %v1372_v24 }
 0xa53   :  { %1309 = vmatprep.subr.bf16.mxu1 %v1448_v0 }
 0xa56   :  { %1310 = vmatpush3.bf16.msra.mxu1 %v1373_v25 }
 0xa57   :  { %1311 = vmatprep.subr.bf16.mxu1 %v1448_v0 }
 0xa5a   :  { %1312 = vmatpush3.bf16.msra.mxu1 %v1374_v26 }
 0xa5b   :  { %1313 = vmatprep.subr.bf16.mxu1 %v1448_v0 }
 0xa5e   :  { %1314 = vmatpush3.bf16.msra.mxu1 %v1375_v27 }
 0xa5f   :  { %1315 = vmatprep.subr.bf16.mxu1 %v1448_v0 }
 0xa62   :  { %1316 = vmatpush3.bf16.msra.mxu1 %v1376_v28 }
 0xb18   :  { %v816_v40 = vpop.f32.mrb[24].mxu1 }
 0xb19   :  { %v823_v29 = vadd.f32 %v816_v40, %v1499_v1  ;;  %v1279_v41 = vpop.f32.mrb[25].mxu1 }
 0xb1a   :  { %v819_v42 = vpop.f32.mrb[26].mxu1 }
 0xb1b   :  { %v1640_v43 = vadd.f32 %v1138_v31, %v823_v29  ;;  %v824_v59 = vadd.f32 %v819_v42, %v1504_v2  ;;  %v1280_v44 = vpop.f32.mrb[27].mxu1  ;;  %v1362_v2 = vld [vmem:[#allocation2 + $0x58] sm:$0xff]  }
 0xb1c   :  { %1284 = vmatpush3.bf16.msra.mxu0 %v1362_v2 }
 0xb1d   :  { %v1643_v45 = vadd.f32 %v1138_v31, %v824_v59  ;;  %831 = vadd.xlane.f32.xlu1 %v1640_v43  ;;  %v837_v1 = vmul.f32 %v1640_v43, %v1640_v43  ;;  %1285 = vmatprep.subr.bf16.mxu0 %v1448_v0 }
 0xb1f   :  { %833 = vadd.xlane.f32.xlu0 %v1643_v45  ;;  %v838_v63 = vmul.f32 %v1643_v45, %v1643_v45 }
 0xb20   :  { %1286 = vmatpush3.bf16.msra.mxu0 %v1363_v48 }
 0xb21   :  { %841 = vadd.xlane.f32.xlu1 %v838_v63  ;;  %1287 = vmatprep.subr.bf16.mxu0 %v1448_v0 }
 0xb23   :  { %839 = vadd.xlane.f32.xlu0 %v837_v1 }
 0xb24   :  { %1288 = vmatpush3.bf16.msra.mxu0 %v1364_v49 }
 0xb25   :  { %1289 = vmatprep.subr.bf16.mxu0 %v1448_v0 }
 0xb28   :  { %1290 = vmatpush3.bf16.msra.mxu0 %v1365_v50 }
 0xb29   :  { %1291 = vmatprep.subr.bf16.mxu0 %v1448_v0 }
 0xb2c   :  { %1292 = vmatpush3.bf16.msra.mxu0 %v1366_v51 }
 0xb2d   :  { %1293 = vmatprep.subr.bf16.mxu0 %v1448_v0 }
 0xb30   :  { %1294 = vmatpush3.bf16.msra.mxu0 %v1367_v52 }
 0xb31   :  { %1295 = vmatprep.subr.bf16.mxu0 %v1448_v0 }
 0xb34   :  { %1296 = vmatpush3.bf16.msra.mxu0 %v1368_v53  ;;  %v1150_v53 = vld [vmem:[%s1688_s1 + $0x17] ss:$0 sm:$0xff] }
 0xbaa   :  { %v832_v54 = vpop.xlane.xlu1 %831 }
 0xbab   :  { %v835_v57 = vmul.f32 0.03125, %v832_v54 }
 0xbac   :  { %v834_v55 = vpop.xlane.xlu0 %833 }
 0xbad   :  { %v836_v58 = vmul.f32 0.03125, %v834_v55  ;;  %v845_v4 = vmul.f32 %v835_v57, %v835_v57  ;;  %v849_v11 = vsub.f32 %v1640_v43, %v835_v57 }
 0xbae   :  { %v842_v60 = vpop.xlane.xlu1 %841 }
 0xbaf   :  { %v846_v61 = vmul.f32 %v836_v58, %v836_v58  ;;  %v844_v62 = vmul.f32 0.03125, %v842_v60  ;;  %v850_v9 = vsub.f32 %v1643_v45, %v836_v58 }
 0xbb0   :  { %v840_v3 = vpop.xlane.xlu0 %839 }
 0xbb1   :  { %v848_v5 = vsub.f32 %v844_v62, %v846_v61  ;;  %v843_v6 = vmul.f32 0.03125, %v840_v3 }
 0xbb3   :  { %v852_v47 = vadd.f32 1e-05, %v848_v5  ;;  %v847_v7 = vsub.f32 %v843_v6, %v845_v4 }
 0xbb5   :  { %1413 = vrsqrt.f32 %v852_v47  ;;  %v851_v8 = vadd.f32 1e-05, %v847_v7 }
 0xbb7   :  { %1415 = vrsqrt.f32 %v851_v8 }
 0xbbf   :  { %v1414_v10 = vpop.eup %1413 }
 0xbc0   :  { %v856_v12 = vmul.f32 %v1414_v10, %v850_v9 }
 0xbc1   :  { %v1416_v13 = vpop.eup %1415 }
 0xbc2   :  { %v855_v14 = vmul.f32 %v1416_v13, %v849_v11  ;;  %v862_v15 = vmul.f32 %v1139_v56, %v856_v12 }
 0xbc4   :  { %v861_v17 = vmul.f32 %v1139_v56, %v855_v14  ;;  %v868_v19 = vadd.f32 %v1140_v16, %v862_v15 }
 0xbc6   :  { %v867_v18 = vadd.f32 %v1140_v16, %v861_v17 }
 0xbc8   :  { %v869_v20 = vpack.c.bf16 %v868_v19, %v867_v18 }
 0xbca   :  { %1298 = vmatmul.mubr.bf16.vlgmr.msra.gmra.mrb[12].mxu0 %v869_v20 }
 0xc9d   :  { %v972_v32 = vpop.f32.mrb[12].mxu0 }
 0xc9e   :  { %v973_v33 = vadd.f32 %v1141_v30, %v972_v32  ;;  %v1299_v34 = vpop.f32.mrb[13].mxu0 }
 0xc9f   :  { %v975_v35 = vpop.f32.mrb[14].mxu0 }
 0xca0   :  { %v981_v36 = vmul.f32 0.044715, %v973_v33  ;;  %v976_v37 = vadd.f32 %v1141_v30, %v975_v35  ;;  %v1300_v38 = vpop.f32.mrb[15].mxu0  ;;  %v979_v2 = vmul.f32 0.5, %v973_v33 }
 0xca2   :  { %v983_v39 = vmul.f32 %v981_v36, %v973_v33  ;;  %v982_v31 = vmul.f32 0.044715, %v976_v37  ;;  %v980_v48 = vmul.f32 0.5, %v976_v37 }
 0xca4   :  { %v985_v40 = vmul.f32 %v983_v39, %v973_v33  ;;  %v984_v29 = vmul.f32 %v982_v31, %v976_v37 }
 0xca6   :  { %v987_v41 = vadd.f32 %v985_v40, %v973_v33  ;;  %v986_v42 = vmul.f32 %v984_v29, %v976_v37 }
 0xca8   :  { %v989_v59 = vmul.f32 0.7978846, %v987_v41  ;;  %v988_v0 = vadd.f32 %v986_v42, %v976_v37 }
 0xcaa   :  { %1417 = vtanh.f32 %v989_v59  ;;  %v990_v44 = vmul.f32 0.7978846, %v988_v0 }
 0xcac   :  { %1419 = vtanh.f32 %v990_v44 }
 0xcb4   :  { %v1418_v63 = vpop.eup %1417 }
 0xcb5   :  { %v993_v1 = vadd.f32 1.0, %v1418_v63 }
 0xcb6   :  { %v1420_v46 = vpop.eup %1419 }
 0xcb7   :  { %v994_v49 = vadd.f32 1.0, %v1420_v46  ;;  %v995_v50 = vmul.f32 %v993_v1, %v979_v2 }
 0xcb9   :  { %v996_v51 = vmul.f32 %v994_v49, %v980_v48 }
 0xcbb   :  { %v997_v52 = vpack.c.bf16 %v996_v51, %v995_v50 }
 0xcbd   :  { %1318 = vmatmul.mubr.bf16.vlgmr.msra.gmra.mrb[28].mxu1 %v997_v52 }
 0xd90   :  { %v1100_v54 = vpop.f32.mrb[28].mxu1 }
 0xd91   :  { %v1101_v55 = vadd.f32 %v1150_v53, %v1100_v54  ;;  %v1319_v57 = vpop.f32.mrb[29].mxu1 }
 0xd92   :  { %v1103_v58 = vpop.f32.mrb[30].mxu1 }
 0xd93   :  { %v1107_v60 = vadd.f32 %v1101_v55, %v1640_v43  ;;  %v1104_v61 = vadd.f32 %v1150_v53, %v1103_v58  ;;  %v1320_v62 = vpop.f32.mrb[31].mxu1 }
 0xd95   :  { %1109 = vst [vmem:[%s1690_s3] sm:$0xff] %v1107_v60  ;;  %v1108_v3 = vadd.f32 %v1104_v61, %v1643_v45 }
 0xd97   :  { %1110 = vst [vmem:[%s1690_s3 + $0x8] sm:$0xff] %v1108_v3 }
 0xd98   :  { %1115 = vsyncpa [#allocation3], 1 }

</bundles_post_ra>
